<compile_context>
chip_gen: v5e
topology: v5e:2x2
jax: 0.10.0
libtpu: 0.0.40
codegen_flags: <defaults>
</compile_context>

<pallas_src>
import jax
import jax.numpy as jnp
from jax.experimental import pallas as pl
from jax.experimental.pallas import tpu as pltpu

HIDDEN = 32


# ----------------------------- kernel ------------------------------------- #
def _make_mlp_kernel(elementwise_dtype, matmul_dtype):
    ew = elementwise_dtype
    mm = matmul_dtype

    def mlp_kernel(x_ref, w1_ref, b1_ref, w2t_ref, b2_ref, w3r_ref, o_ref):
        # x_ref  : (1, tm)        batch tile, batch on lanes
        # w1_ref : (32, 1)  ew    layer-1 weight as a hidden column
        # b1_ref : (32, 1)  ew
        # w2t_ref: (32, 32) mm    layer-2 weight stored (out, in): z2 = W2t @ h1
        # b2_ref : (32, 1)  ew
        # w3r_ref: (1, 32)  mm    layer-3 weight row (no bias)
        # o_ref  : (1, tm)
        x = x_ref[...].astype(ew)                               # (1, tm)

        # ---- Layer 1 + tanh: K=1 "matmul" -> VPU broadcast FMA + EUP tanh ----
        # (the (1,tm)->(32,tm) broadcast is folded into the multiply)
        h1 = jnp.tanh(w1_ref[...] * x + b1_ref[...])            # (32, tm) ew

        # ---- Layer 2 + tanh: the only big matmul -> MXU, f32 accumulation ----
        z2 = jnp.dot(w2t_ref[...], h1.astype(mm),
                     preferred_element_type=jnp.float32)        # (32, tm) f32
        h2 = jnp.tanh(z2.astype(ew) + b2_ref[...])              # (32, tm) ew

        # ---- Layer 3 (no bias): N=1 matmul kept on the MXU (plenty of slack);
        # avoids the (32,tm) h2*w3 temp and the XLU sublane reduce.
        out = jnp.dot(w3r_ref[...], h2.astype(mm),
                      preferred_element_type=jnp.float32)       # (1, tm) f32
        o_ref[...] = out.astype(o_ref.dtype)

    return mlp_kernel


# --------------------------- helpers / wrapper ----------------------------- #
def mlp_reference(x, p):
    h = jnp.tanh(x @ p["w1"] + p["b1"])
    h = jnp.tanh(h @ p["w2"] + p["b2"])
    return h @ p["w3"]


def _device_kind():
    try:
        return jax.devices()[0].device_kind.lower()
    except Exception:
        return ""


def _default_elementwise_dtype():
    kind = _device_kind()
    if any(tag in kind for tag in ("v6", "v7", "7x")):
        # v6e/v7x: bf16 VPU + EUP -> packed (16,128) vregs halve the tanh slabs.
        return jnp.bfloat16
    # v5e and older: no bf16 VPU/EUP; keep elementwise math in f32.
    return jnp.float32


def _is_dual_core():
    kind = _device_kind()
    return any(tag in kind for tag in ("v7", "7x"))


def _round_up(v, m):
    return ((v + m - 1) // m) * m


def _choose_tile(n, tm, dual_core):
    tm = max(128, (int(tm) // 128) * 128)
    if not dual_core:
        # Single TensorCore (v5e/v6e): a single grid step when N <= tm is fine.
        return min(tm, _round_up(n, 128))
    # v7x: the 'parallel' grid axis is sharded across 2 TensorCores -> pick a
    # tile that yields an even step count (>= 2) so both cores get equal work.
    steps = max(2, pl.cdiv(n, tm))
    if steps % 2:
        steps += 1
    tm_eff = _round_up(pl.cdiv(n, steps), 128)
    while tm_eff > 128 and pl.cdiv(n, tm_eff) % 2 != 0:
        tm_eff -= 128
    return tm_eff


def mlp_forward(x, params, *, tm=16384, elementwise_dtype=None,
                matmul_dtype=None, min_pallas_n=1024):
    """Forward pass of the 1-32-32-1 tanh MLP.

    x: (N, 1) float32. params: weights stored (fan_in, fan_out).
    Tiny batches bypass the kernel (launch overhead > work).
    """
    N, fin = x.shape
    assert fin == 1, "module expects scalar input features"

    if N < min_pallas_n:
        return mlp_reference(x, params)

    ew = elementwise_dtype if elementwise_dtype is not None else _default_elementwise_dtype()
    mm = matmul_dtype if matmul_dtype is not None else jnp.bfloat16

    # Re-lay weights out for the batch-on-lanes kernel.
    w1c = params["w1"].reshape(HIDDEN, 1).astype(ew)     # (1,32) -> (32,1)
    b1c = params["b1"].reshape(HIDDEN, 1).astype(ew)
    w2t = params["w2"].T.astype(mm)                      # (in,out) -> (out,in)
    b2c = params["b2"].reshape(HIDDEN, 1).astype(ew)
    w3r = params["w3"].reshape(1, HIDDEN).astype(mm)     # (32,1) -> (1,32) row

    tm_eff = _choose_tile(N, tm, _is_dual_core())
    grid = (pl.cdiv(N, tm_eff),)

    # No whole-array pad: the final partial block is masked by Pallas. Tail
    # lanes only pass through bounded ops (tanh / small dots) and the masked
    # store never writes them back.
    x_row = x.reshape(1, N)

    cost = pl.CostEstimate(
        flops=int(N) * (2 * HIDDEN * HIDDEN + 2 * HIDDEN + 4 * HIDDEN),
        transcendentals=int(N) * 2 * HIDDEN,
        bytes_accessed=int(N) * 2 * x.dtype.itemsize,
    )

    kernel = _make_mlp_kernel(ew, mm)

    out_row = pl.pallas_call(
        kernel,
        out_shape=jax.ShapeDtypeStruct((1, N), x.dtype),
        grid_spec=pltpu.PrefetchScalarGridSpec(
            num_scalar_prefetch=0,
            grid=grid,
            in_specs=[
                # lane-dense batch tile of x
                pl.BlockSpec((1, tm_eff), lambda i: (0, i)),
                # tiny weights/biases: full arrays, same block every step
                pl.BlockSpec((HIDDEN, 1), lambda i: (0, 0)),
                pl.BlockSpec((HIDDEN, 1), lambda i: (0, 0)),
                pl.BlockSpec((HIDDEN, HIDDEN), lambda i: (0, 0)),
                pl.BlockSpec((HIDDEN, 1), lambda i: (0, 0)),
                pl.BlockSpec((1, HIDDEN), lambda i: (0, 0)),
            ],
            out_specs=pl.BlockSpec((1, tm_eff), lambda i: (0, i)),
        ),
        compiler_params=pltpu.CompilerParams(
            dimension_semantics=("parallel",),
            vmem_limit_bytes=32 * 1024 * 1024,
        ),
        cost_estimate=cost,
    )(x_row, w1c, b1c, w2t, b2c, w3r)

    return out_row.reshape(N, 1)


# ------------------------- deterministic params ---------------------------- #
def init_params(key):
    """Mimics nn.Linear default init: U(-1/sqrt(fan_in), 1/sqrt(fan_in)).
    Weights stored transposed as (fan_in, fan_out)."""
    k1, k2, k3, k4, k5 = jax.random.split(key, 5)

    def unif(k, shape, fan_in):
        bound = 1.0 / jnp.sqrt(jnp.float32(fan_in))
        return jax.random.uniform(k, shape, jnp.float32, -bound, bound)

    return {
        "w1": unif(k1, (1, HIDDEN), 1),
        "b1": unif(k2, (1, HIDDEN), 1),
        "w2": unif(k3, (HIDDEN, HIDDEN), HIDDEN),
        "b2": unif(k4, (1, HIDDEN), HIDDEN),
        "w3": unif(k5, (HIDDEN, 1), HIDDEN),   # L3 has no bias
    }


# --------------------------------- main ------------------------------------ #
if __name__ == "__main__":
    key = jax.random.PRNGKey(0)
    pkey, xkey = jax.random.split(key)

    params = init_params(pkey)

    N = 4096
    x = jax.random.normal(xkey, (N, 1), jnp.float32)
    ref = mlp_reference(x, params)

    # 1) Full-precision kernel path: f32 elementwise + f32 matmul operands.
    #    Only MXU operand-rounding-level differences vs the XLA reference.
    out_f32 = jax.block_until_ready(
        mlp_forward(x, params, tm=2048,
                    elementwise_dtype=jnp.float32, matmul_dtype=jnp.float32))
    assert out_f32.shape == (N, 1)
    assert jnp.allclose(out_f32, ref, atol=3e-2, rtol=3e-2), \
        "f32 kernel mismatch vs JAX reference"

    # 2) Auto path: bf16 elementwise + bf16 MXU operands on v6e/v7x, f32
    #    elementwise + bf16 MXU operands on v5e/older (f32 accumulation kept).
    #    Tolerance covers bf16 tanh + bf16 operand rounding (~1e-2 typical).
    out_auto = jax.block_until_ready(mlp_forward(x, params))
    assert out_auto.shape == (N, 1)
    assert jnp.allclose(out_auto, ref, atol=1e-1, rtol=5e-2), \
        "auto-dtype kernel mismatch vs JAX reference"

    # 3) Batch not a multiple of the tile: exercises the unpadded partial
    #    final block (masked stores, no jnp.pad).
    N2 = 3000
    out_tail = jax.block_until_ready(mlp_forward(x[:N2], params, tm=1024))
    assert out_tail.shape == (N2, 1)
    assert jnp.allclose(out_tail, ref[:N2], atol=1e-1, rtol=5e-2), \
        "partial-final-block mismatch vs JAX reference"

    # 4) Tiny batch falls back to fused XLA (kernel launch not worth it).
    out_small = jax.block_until_ready(mlp_forward(x[:64], params))
    assert jnp.allclose(out_small, ref[:64], atol=1e-4, rtol=1e-4)

    print("KERNEL_OK")
</pallas_src>

<mosaic_0001>
module attributes {stable_mosaic.version = 11 : i64} {
  func.func @mlp_kernel(%arg0: i32, %arg1: memref<1x2048xf32, #tpu.memory_space<vmem>>, %arg2: memref<32x1xf32, #tpu.memory_space<vmem>>, %arg3: memref<32x1xf32, #tpu.memory_space<vmem>>, %arg4: memref<32x32xf32, #tpu.memory_space<vmem>>, %arg5: memref<32x1xf32, #tpu.memory_space<vmem>>, %arg6: memref<1x32xf32, #tpu.memory_space<vmem>>, %arg7: memref<1x2048xf32, #tpu.memory_space<vmem>>) attributes {dimension_semantics = [#tpu.dimension_semantics<parallel>], iteration_bounds = array<i64: 2>, scalar_prefetch = 0 : i64, scratch_operands = 0 : i64, tpu.core_type = #tpu.core_type<tc>, window_params = [{transform_indices = @transform_0, window_bounds = array<i64: 1, 2048>}, {pipeline_mode = #tpu.pipeline_mode<synchronous>, transform_indices = @transform_1, window_bounds = array<i64: 32, 1>}, {pipeline_mode = #tpu.pipeline_mode<synchronous>, transform_indices = @transform_2, window_bounds = array<i64: 32, 1>}, {pipeline_mode = #tpu.pipeline_mode<synchronous>, transform_indices = @transform_3, window_bounds = array<i64: 32, 32>}, {pipeline_mode = #tpu.pipeline_mode<synchronous>, transform_indices = @transform_4, window_bounds = array<i64: 32, 1>}, {pipeline_mode = #tpu.pipeline_mode<synchronous>, transform_indices = @transform_5, window_bounds = array<i64: 1, 32>}, {transform_indices = @transform_6, window_bounds = array<i64: 1, 2048>}]} {
    %c0 = arith.constant 0 : index
    %c0_0 = arith.constant 0 : index
    %0 = vector.load %arg1[%c0, %c0_0] : memref<1x2048xf32, #tpu.memory_space<vmem>>, vector<1x2048xf32>
    %c0_1 = arith.constant 0 : index
    %c0_2 = arith.constant 0 : index
    %1 = vector.load %arg2[%c0_1, %c0_2] : memref<32x1xf32, #tpu.memory_space<vmem>>, vector<32x1xf32>
    %2 = vector.broadcast %1 : vector<32x1xf32> to vector<32x2048xf32>
    %3 = vector.broadcast %0 : vector<1x2048xf32> to vector<32x2048xf32>
    %4 = arith.mulf %2, %3 : vector<32x2048xf32>
    %c0_3 = arith.constant 0 : index
    %c0_4 = arith.constant 0 : index
    %5 = vector.load %arg3[%c0_3, %c0_4] : memref<32x1xf32, #tpu.memory_space<vmem>>, vector<32x1xf32>
    %6 = vector.broadcast %5 : vector<32x1xf32> to vector<32x2048xf32>
    %7 = arith.addf %4, %6 : vector<32x2048xf32>
    %8 = math.tanh %7 : vector<32x2048xf32>
    %c0_5 = arith.constant 0 : index
    %c0_6 = arith.constant 0 : index
    %9 = vector.load %arg4[%c0_5, %c0_6] : memref<32x32xf32, #tpu.memory_space<vmem>>, vector<32x32xf32>
    %cst = arith.constant dense<0.000000e+00> : vector<32x2048xf32>
    %10 = tpu.matmul %9, %8, %cst {dimension_numbers = #tpu.dot_dimension_numbers<[1], [0], [0], [1], [0, 0, 1, 1], [], []>} : vector<32x32xf32>, vector<32x2048xf32>, vector<32x2048xf32> -> vector<32x2048xf32>
    %c0_7 = arith.constant 0 : index
    %c0_8 = arith.constant 0 : index
    %11 = vector.load %arg5[%c0_7, %c0_8] : memref<32x1xf32, #tpu.memory_space<vmem>>, vector<32x1xf32>
    %12 = vector.broadcast %11 : vector<32x1xf32> to vector<32x2048xf32>
    %13 = arith.addf %10, %12 : vector<32x2048xf32>
    %14 = math.tanh %13 : vector<32x2048xf32>
    %c0_9 = arith.constant 0 : index
    %c0_10 = arith.constant 0 : index
    %15 = vector.load %arg6[%c0_9, %c0_10] : memref<1x32xf32, #tpu.memory_space<vmem>>, vector<1x32xf32>
    %cst_11 = arith.constant dense<0.000000e+00> : vector<1x2048xf32>
    %16 = tpu.matmul %15, %14, %cst_11 {dimension_numbers = #tpu.dot_dimension_numbers<[1], [0], [0], [1], [0, 0, 1, 1], [], []>} : vector<1x32xf32>, vector<32x2048xf32>, vector<1x2048xf32> -> vector<1x2048xf32>
    %c0_12 = arith.constant 0 : index
    %c0_13 = arith.constant 0 : index
    %17 = vector.load %arg7[%c0_12, %c0_13] : memref<1x2048xf32, #tpu.memory_space<vmem>>, vector<1x2048xf32>
    tpu.vector_store %arg7[%c0_12, %c0_13], %16 {strides = array<i32>} : memref<1x2048xf32, #tpu.memory_space<vmem>>, vector<1x2048xf32>,
    return
  }
  func.func @transform_0(%arg0: i32) -> (i32, i32) {
    %c0_i32 = arith.constant 0 : i32
    %c0_i32_0 = arith.constant 0 : i32
    return %c0_i32, %arg0 : i32, i32
  }
  func.func @transform_1(%arg0: i32) -> (i32, i32) {
    %c0_i32 = arith.constant 0 : i32
    %c0_i32_0 = arith.constant 0 : i32
    %c0_i32_1 = arith.constant 0 : i32
    return %c0_i32, %c0_i32_0 : i32, i32
  }
  func.func @transform_2(%arg0: i32) -> (i32, i32) {
    %c0_i32 = arith.constant 0 : i32
    %c0_i32_0 = arith.constant 0 : i32
    %c0_i32_1 = arith.constant 0 : i32
    return %c0_i32, %c0_i32_0 : i32, i32
  }
  func.func @transform_3(%arg0: i32) -> (i32, i32) {
    %c0_i32 = arith.constant 0 : i32
    %c0_i32_0 = arith.constant 0 : i32
    %c0_i32_1 = arith.constant 0 : i32
    return %c0_i32, %c0_i32_0 : i32, i32
  }
  func.func @transform_4(%arg0: i32) -> (i32, i32) {
    %c0_i32 = arith.constant 0 : i32
    %c0_i32_0 = arith.constant 0 : i32
    %c0_i32_1 = arith.constant 0 : i32
    return %c0_i32, %c0_i32_0 : i32, i32
  }
  func.func @transform_5(%arg0: i32) -> (i32, i32) {
    %c0_i32 = arith.constant 0 : i32
    %c0_i32_0 = arith.constant 0 : i32
    %c0_i32_1 = arith.constant 0 : i32
    return %c0_i32, %c0_i32_0 : i32, i32
  }
  func.func @transform_6(%arg0: i32) -> (i32, i32) {
    %c0_i32 = arith.constant 0 : i32
    %c0_i32_0 = arith.constant 0 : i32
    return %c0_i32, %arg0 : i32, i32
  }
}

</mosaic_0001>

<bundles_post_ra>
// kernel: tpu_custom_call.1
= control target key start
LH: loop header
LB: loop body
LE: loop exit
PB: predicated region body
PF: predicated region fallthrough
CT: control target
= control target key end

     0   :  { %11 = vsyncpa [#allocation3], 0  ;;  %s2697_s0 = inlined_call_operand.vmem [shape: f32[1,4096], index: 0, kind: input, shape index: {}]   ;;  %s2698_s1 = inlined_call_operand.vmem [shape: f32[32,1], index: 1, kind: input, shape index: {}]   ;;  %s2699_s2 = inlined_call_operand.vmem [shape: f32[32,1], index: 2, kind: input, shape index: {}]   ;;  %s2700_s3 = inlined_call_operand.vmem [shape: f32[32,32], index: 3, kind: input, shape index: {}]   ;;  %s2701_s4 = inlined_call_operand.vmem [shape: f32[32,1], index: 4, kind: input, shape index: {}]   ;;  %s2702_s5 = inlined_call_operand.vmem [shape: f32[1,32], index: 5, kind: input, shape index: {}]   ;;  %s2703_s6 = inlined_call_operand.hbm [shape: f32[1,4096], index: 6, kind: output, shape index: {}]  }
   0x1   :  { %13 = vsyncpa [#allocation3 + $0x1], 0  ;;  %s2035_s21 = smov 0   ;;  %s2037_s22 = smov 0  }
   0x2   :  { %s2039_s23 = smov 0   ;;  %s2041_s24 = smov 0  }
   0x3 LB: > { %s1545_s25 = sadd.s32 4294967295, %s1997_s24   ;;  %s1546_s26 = sadd.s32 4294967294, %s1997_s24   ;;  %s1997_s24 = sphi %s2041_s24, %s2709_s24   ;;  %s1993_s23 = sphi %s2039_s23, %s2708_s23   ;;  %s1989_s22 = sphi %s2037_s22, %s2707_s22   ;;  %s1985_s21 = sphi %s2035_s21, %s2706_s21  }
   0x4   : > { %s2058_s27 = sadd.s32 1, %s1997_s24   ;;  %s157_s28 = sadd.s32 1, %s1993_s23 }
   0x5   : > { %s154_s29 = ssub.s32 %s1997_s24, %s2058_s27  ;;  %p167_p0 = scmp.ne.s32.totalorder %s1993_s23, %s1989_s22 }
   0x6   : > { %p155_p1 = scmp.eq.s32.totalorder %s154_s29, 0  ;;  %p168_p2 = scmp.eq.s32.totalorder %s1545_s25, 1 }
   0x7   : > { %p173_p3 = scmp.ne.s32.totalorder %s1989_s22, %s1985_s21  ;;  %p174_p4 = scmp.eq.s32.totalorder %s1546_s26, 1 }
   0x8   : > { %s2070_s30 = scalar_select %p155_p1, %s1993_s23, %s157_s28  }
   0x9   : > { %p2072_p5 = por %p168_p2, %p167_p0  ;;  %p2076_p6 = por %p174_p4, %p173_p3 }
   0xa   : > { %p1549_p7 = scmp.ge.s32.totalorder %s1997_s24, 1  ;;  %p215_p8 = scmp.lt.s32.totalorder %s1997_s24, 3 }
   0xc   : > { %p216_p9 = pnand %p1549_p7, %p215_p8 }
   0xd   : > { %s2120_s18 = sshll.u32 (!%p216_p9), %s1545_s25, 4  ;;  %s241_s17 = sand.u32 (!%p216_p9), 1, %s1989_s22  }
   0xe   : > { %219 = sbr.rel (%p216_p9) target bundleno = 578 (0x242), region = 44  ;;  %p245_p10 = scmp.lt.s32.totalorder (!%p216_p9), %s2120_s18, 31 }
   0xf   : > { %s1485_s25 = scalar_lea.hbm (!%p216_p9), %s2703_s6, %s2120_s18  ;;  %s1955_s14 = scalar_lea.hbm (!%p216_p9), %s2703_s6, 32 }
  0x10   : > { %s1489_s9 = sshll.u32 (!%p216_p9), %s1485_s25, 4  ;;  %s1490_s9 = int_to_ptr.hbm [resolvable:$true] %s1489_s9 }
  0x11   : > { %s1949_s10 = sshra.s32 (!%p216_p9), %s1490_s9, 4  ;;  %s1950_s10 = int_to_ptr.hbm [resolvable:$true] %s1949_s10 }
  0x12   : > { %s1951_s11 = scalar_lea.hbm (!%p216_p9), %s1950_s10, 16  ;;  %p1956_p0 = scmp.lt.s32.totalorder (!%p216_p9), %s1950_s10, %s2703_s6 }
  0x13   : > { %v377_v0 = vld [vmem:[%s2699_s2 + $0x18] sm:$0xff]  ;;  %v1999_v2 = vmov 0   ;;  %v376_v3 = vld [vmem:[%s2699_s2 + $0x10] sm:$0xff]  ;;  %v253_v5 = vld [vmem:[%s2698_s1 + $0x8] sm:$0xff]  ;;  %s246_s19 = scalar_select %p245_p10, %s2120_s18, 31  ;;  %vm554_vm0 = vcmask 261120  }
  0x14   : > { %v255_v1 = vld [vmem:[%s2698_s1 + $0x18] sm:$0xff]  ;;  %1677 = vset.pattern.permute.xlu1 %v1999_v2  ;;  %1676 = vset.pattern.permute.xlu0 %v1999_v2  ;;  %v254_v4 = vld [vmem:[%s2698_s1 + $0x10] sm:$0xff]  ;;  %v252_v6 = vld [vmem:[%s2698_s1] sm:$0xff]  ;;  %vm1455_vm1 = vcmask 1044484   ;;  %vm1451_vm2 = vcmask 1042434   ;;  %vm1457_vm3 = vcmask 1046534   ;;  %p1952_p11 = scmp.ne.s32.totalorder %s1950_s10, %s1951_s11  ;;  %p1957_p1 = scmp.lt.s32.totalorder %s1955_s14, %s1951_s11 }
  0x15   : > { %395 = vperm.xlu1 %1677, %v377_v0   ;;  %273 = vperm.xlu0 %1676, %v255_v1   ;;  %v375_v7 = vld [vmem:[%s2699_s2 + $0x8] sm:$0xff]  ;;  %v374_v8 = vld [vmem:[%s2699_s2] sm:$0xff]  ;;  %v533_v9 = vld [vmem:[%s2701_s4 + $0x18] sm:$0xff]  ;;  %s2127_s28 = scalar_lea.vmem %s2697_s0, %s246_s19  ;;  %vm1449_vm4 = vcmask 1040384   ;;  %vm1459_vm5 = vcmask 1045508   ;;  %vm1453_vm6 = vcmask 1041408  }
  0x16   : > { %1678 = vset.pattern.permute.xlu2 %v1999_v2  ;;  %v532_v10 = vld [vmem:[%s2701_s4 + $0x10] sm:$0xff]  ;;  %v531_v11 = vld [vmem:[%s2701_s4 + $0x8] sm:$0xff]  ;;  %v530_v12 = vld [vmem:[%s2701_s4] sm:$0xff]  ;;  %s1550_s19 = sshll.u32 %s241_s17, 4  ;;  %vm1461_vm7 = vcmask 1043456   ;;  %s1475_s18 = scalar_lea.sflag [#allocation3], %s241_s17 }
  0x17   : > { %390 = vperm.xlu2 %1678, %v376_v3   ;;  %v250_v13 = vld [vmem:[%s2127_s28] sm:$0xff]  ;;  %s243_s20 = scalar_lea.vmem [#allocation2], %s1550_s19  ;;  %p1953_p12 = pnand %p1952_p11, %p2072_p5 }
  0x18   : > { %v278_v14 = vperm.slane %v250_v13, 0  ;;  %v279_v15 = vperm.slane %v250_v13, 1  ;;  %v280_v16 = vperm.slane %v250_v13, 2  ;;  %v2130_v17 = vperm.slane %v250_v13, 3  ;;  %s1487_s29 = sshll.u32 %s243_s20, 4  ;;  %p1958_p2 = por %p1957_p1, %p1956_p0  ;;  %s1488_s29 = int_to_ptr.vmem [resolvable:$true] %s1487_s29 }
  0x19   : > { %v2147_v29 = vperm.slane %v250_v13, 4  ;;  %v2165_v46 = vperm.slane %v250_v13, 5  ;;  %v2179_v55 = vperm.slane %v250_v13, 6  ;;  %v2184_v59 = vperm.slane %v250_v13, 7  ;;  %p1954_p13 = pneg %p1953_p12 }
  0x1b   : > { %p1959_p3 = pnand %p1958_p2, %p1954_p13 }
  0x1d   : > { %268 = vperm.xlu0 %1676, %v254_v4   ;;  %263 = vperm.xlu1 %1677, %v253_v5  }
  0x1f   : > { %258 = vperm.xlu2 %1678, %v252_v6  }
  0x25   : > { %385 = vperm.xlu0 %1676, %v375_v7   ;;  %380 = vperm.xlu1 %1677, %v374_v8  }
  0x27   : > { %551 = vperm.xlu2 %1678, %v533_v9  }
  0x2d   : > { %546 = vperm.xlu0 %1676, %v532_v10   ;;  %541 = vperm.xlu1 %1677, %v531_v11  }
  0x2f   : > { %536 = vperm.xlu2 %1678, %v530_v12  }
  0x71   : > { %v2145_v28 = vpop.permute.xlu2 %390 }
  0x79   : > { %v2167_v47 = vpop.permute.xlu2 %258 }
  0x7a   : > { %v310_v54 = vmul.f32 %v278_v14, %v2167_v47  ;;  %v311_v61 = vmul.f32 %v279_v15, %v2167_v47  ;;  %v312_v0 = vmul.f32 %v280_v16, %v2167_v47  ;;  %v313_v4 = vmul.f32 %v2130_v17, %v2167_v47 }
  0x87   : > { %v2132_v18 = vpop.permute.xlu1 %395  ;;  %v2134_v19 = vpop.permute.xlu0 %273 }
  0x88   : > { %v358_v20 = vmul.f32 %v278_v14, %v2134_v19  ;;  %v359_v21 = vmul.f32 %v279_v15, %v2134_v19  ;;  %v360_v22 = vmul.f32 %v280_v16, %v2134_v19  ;;  %v361_v23 = vmul.f32 %v2130_v17, %v2134_v19 }
  0x89   : > { %v362_v36 = vmul.f32 %v2147_v29, %v2134_v19  ;;  %v363_v1 = vmul.f32 %v2165_v46, %v2134_v19  ;;  %v364_v5 = vmul.f32 %v2179_v55, %v2134_v19  ;;  %v365_v8 = vmul.f32 %v2184_v59, %v2134_v19 }
  0x8a   : > { %v446_v24 = vadd.f32 %v2132_v18, %v358_v20  ;;  %v447_v25 = vadd.f32 %v2132_v18, %v359_v21  ;;  %v448_v26 = vadd.f32 %v2132_v18, %v360_v22  ;;  %v449_v27 = vadd.f32 %v2132_v18, %v361_v23 }
  0x8b   : > { %v450_v45 = vadd.f32 %v2132_v18, %v362_v36  ;;  %v451_v12 = vadd.f32 %v2132_v18, %v363_v1  ;;  %v453_v20 = vadd.f32 %v2132_v18, %v365_v8 }
  0x8c   : > { %1679 = vtanh.f32 %v446_v24 }
  0x8d   : > { %1681 = vtanh.f32 %v447_v25  ;;  %v2214_v25 = vld [vmem:[%s2127_s28 + $0x8] sm:$0xff] }
  0x8e   : > { %1683 = vtanh.f32 %v448_v26 }
  0x8f   : > { %v2149_v30 = vpop.permute.xlu0 %268  ;;  %v2151_v31 = vpop.permute.xlu1 %263  ;;  %1685 = vtanh.f32 %v449_v27 }
  0x90   : > { %v342_v32 = vmul.f32 %v278_v14, %v2149_v30  ;;  %v343_v33 = vmul.f32 %v279_v15, %v2149_v30  ;;  %v344_v34 = vmul.f32 %v280_v16, %v2149_v30  ;;  %v345_v35 = vmul.f32 %v2130_v17, %v2149_v30 }
  0x91   : > { %v326_v48 = vmul.f32 %v278_v14, %v2151_v31  ;;  %v327_v49 = vmul.f32 %v279_v15, %v2151_v31  ;;  %v328_v50 = vmul.f32 %v280_v16, %v2151_v31  ;;  %v329_v53 = vmul.f32 %v2130_v17, %v2151_v31 }
  0x92   : > { %v1680_v37 = vpop.eup %1679  ;;  %v430_v38 = vadd.f32 %v2145_v28, %v342_v32  ;;  %v431_v39 = vadd.f32 %v2145_v28, %v343_v33  ;;  %v432_v40 = vadd.f32 %v2145_v28, %v344_v34  ;;  %v433_v42 = vadd.f32 %v2145_v28, %v345_v35  ;;  %v2220_v32 = vld [vmem:[%s2700_s3] sm:$0xff] }
  0x93   : > { %v1682_v41 = vpop.eup %1681  ;;  %579 = vmatpush.msra.mxu0 %v1680_v37  ;;  %v346_v11 = vmul.f32 %v2147_v29, %v2149_v30  ;;  %v347_v13 = vmul.f32 %v2165_v46, %v2149_v30  ;;  %v452_v15 = vadd.f32 %v2132_v18, %v364_v5  ;;  %v348_v16 = vmul.f32 %v2179_v55, %v2149_v30 }
  0x94   : > { %v1684_v43 = vpop.eup %1683  ;;  %608 = vmatpush.msra.mxu1 %v1682_v41  ;;  %1687 = vtanh.f32 %v430_v38  ;;  %v349_v21 = vmul.f32 %v2184_v59, %v2149_v30  ;;  %v330_v34 = vmul.f32 %v2147_v29, %v2151_v31  ;;  %v331_v37 = vmul.f32 %v2165_v46, %v2151_v31 }
  0x95   : > { %v1686_v44 = vpop.eup %1685  ;;  %637 = vmatpush.msra.mxu2 %v1684_v43  ;;  %1689 = vtanh.f32 %v431_v39  ;;  %v434_v23 = vadd.f32 %v2145_v28, %v346_v11  ;;  %v435_v26 = vadd.f32 %v2145_v28, %v347_v13  ;;  %v436_v33 = vadd.f32 %v2145_v28, %v348_v16 }
  0x96   : > { %666 = vmatpush.msra.mxu3 %v1686_v44  ;;  %1691 = vtanh.f32 %v432_v40  ;;  %v437_v36 = vadd.f32 %v2145_v28, %v349_v21  ;;  %v332_v40 = vmul.f32 %v2179_v55, %v2151_v31  ;;  %v2232_v41 = vperm.slane %v2214_v25, 0 }
  0x97   : > { %v2172_v51 = vpop.permute.xlu0 %385  ;;  %v2174_v52 = vpop.permute.xlu1 %380  ;;  %1693 = vtanh.f32 %v433_v42  ;;  %v333_v44 = vmul.f32 %v2184_v59, %v2151_v31 }
  0x98   : > { %v414_v56 = vadd.f32 %v2172_v51, %v326_v48  ;;  %v415_v57 = vadd.f32 %v2172_v51, %v327_v49  ;;  %v416_v58 = vadd.f32 %v2172_v51, %v328_v50  ;;  %v417_v60 = vadd.f32 %v2172_v51, %v329_v53 }
  0x99   : > { %1695 = vtanh.f32 %v450_v45  ;;  %v398_v63 = vadd.f32 %v2174_v52, %v310_v54  ;;  %v399_v3 = vadd.f32 %v2174_v52, %v311_v61  ;;  %v400_v7 = vadd.f32 %v2174_v52, %v312_v0 }
  0x9a   : > { %v1688_v62 = vpop.eup %1687  ;;  %1697 = vtanh.f32 %v414_v56  ;;  %v401_v10 = vadd.f32 %v2174_v52, %v313_v4  ;;  %v418_v39 = vadd.f32 %v2172_v51, %v330_v34  ;;  %v419_v43 = vadd.f32 %v2172_v51, %v331_v37  ;;  %v2276_v4 = vld [vmem:[%s2700_s3 + $0x8] sm:$0xff]  ;;  %v2309_v34 = vld [vmem:[%s2700_s3 + $0x10] sm:$0xff] }
  0x9b   : > { %v1690_v2 = vpop.eup %1689  ;;  %580 = vmatpush.msra.mxu0 %v1688_v62  ;;  %1699 = vtanh.f32 %v415_v57  ;;  %v2240_v45 = vperm.slane %v2214_v25, 1  ;;  %v420_v49 = vadd.f32 %v2172_v51, %v332_v40  ;;  %v314_v50 = vmul.f32 %v2147_v29, %v2167_v47 }
  0x9c   : > { %v1692_v6 = vpop.eup %1691  ;;  %609 = vmatpush.msra.mxu1 %v1690_v2  ;;  %1701 = vtanh.f32 %v416_v58  ;;  %v2248_v53 = vperm.slane %v2214_v25, 2  ;;  %v421_v56 = vadd.f32 %v2172_v51, %v333_v44  ;;  %v315_v57 = vmul.f32 %v2165_v46, %v2167_v47 }
  0x9d   : > { %v1694_v9 = vpop.eup %1693  ;;  %638 = vmatpush.msra.mxu2 %v1692_v6  ;;  %1703 = vtanh.f32 %v417_v60  ;;  %v2256_v58 = vperm.slane %v2214_v25, 3  ;;  %v402_v29 = vadd.f32 %v2174_v52, %v314_v50  ;;  %v316_v61 = vmul.f32 %v2179_v55, %v2167_v47 }
  0x9e   : > { %667 = vmatpush.msra.mxu3 %v1694_v9  ;;  %1705 = vtanh.f32 %v398_v63  ;;  %v366_v62 = vmul.f32 %v2232_v41, %v2134_v19  ;;  %v403_v46 = vadd.f32 %v2174_v52, %v315_v57  ;;  %v317_v0 = vmul.f32 %v2184_v59, %v2167_v47 }
  0x9f   : > { %v1696_v14 = vpop.eup %1695  ;;  %1707 = vtanh.f32 %v399_v3  ;;  %v367_v1 = vmul.f32 %v2240_v45, %v2134_v19  ;;  %v404_v55 = vadd.f32 %v2174_v52, %v316_v61  ;;  %v368_v3 = vmul.f32 %v2248_v53, %v2134_v19 }
  0xa0   : > { %v1698_v17 = vpop.eup %1697  ;;  %1709 = vtanh.f32 %v400_v7  ;;  %v405_v59 = vadd.f32 %v2174_v52, %v317_v0  ;;  %v369_v6 = vmul.f32 %v2256_v58, %v2134_v19  ;;  %v454_v8 = vadd.f32 %v2132_v18, %v366_v62 }
  0xa1   : > { %v1700_v22 = vpop.eup %1699  ;;  %581 = vmatpush.msra.mxu0 %v1698_v17  ;;  %1711 = vtanh.f32 %v401_v10  ;;  %v350_v9 = vmul.f32 %v2232_v41, %v2149_v30  ;;  %v455_v11 = vadd.f32 %v2132_v18, %v367_v1  ;;  %v335_v37 = vmul.f32 %v2240_v45, %v2151_v31 }
  0xa2   : > { %v1702_v24 = vpop.eup %1701  ;;  %610 = vmatpush.msra.mxu1 %v1700_v22  ;;  %1713 = vtanh.f32 %v451_v12  ;;  %v351_v12 = vmul.f32 %v2240_v45, %v2149_v30  ;;  %v457_v17 = vadd.f32 %v2132_v18, %v369_v6  ;;  %v336_v40 = vmul.f32 %v2248_v53, %v2151_v31 }
  0xa3   : > { %v1704_v27 = vpop.eup %1703  ;;  %639 = vmatpush.msra.mxu2 %v1702_v24  ;;  %1715 = vtanh.f32 %v452_v15  ;;  %v352_v15 = vmul.f32 %v2248_v53, %v2149_v30  ;;  %v438_v22 = vadd.f32 %v2145_v28, %v350_v9  ;;  %v423_v44 = vadd.f32 %v2172_v51, %v335_v37 }
  0xa4   : > { %v1706_v35 = vpop.eup %1705  ;;  %668 = vmatpush.msra.mxu3 %v1704_v27  ;;  %1717 = vtanh.f32 %v453_v20  ;;  %v353_v20 = vmul.f32 %v2256_v58, %v2149_v30  ;;  %v439_v24 = vadd.f32 %v2145_v28, %v351_v12  ;;  %v2334_v57 = vperm.slane %v2214_v25, 6 }
  0xa5   : > { %v1708_v38 = vpop.eup %1707  ;;  %582 = vmatpush.msra.mxu0 %v1706_v35  ;;  %1719 = vtanh.f32 %v434_v23  ;;  %v440_v27 = vadd.f32 %v2145_v28, %v352_v15  ;;  %v319_v61 = vmul.f32 %v2240_v45, %v2167_v47  ;;  %v2342_v62 = vperm.slane %v2214_v25, 7 }
  0xa6   : > { %v1710_v42 = vpop.eup %1709  ;;  %611 = vmatpush.msra.mxu1 %v1708_v38  ;;  %1552 = vmatmul.msk.f32.vlgmr.msra.gmra.mxu0 %vm554_vm0, %v2220_v32  ;;  %1721 = vtanh.f32 %v435_v26  ;;  %v321_v1 = vmul.f32 %v2256_v58, %v2167_v47  ;;  %v340_v37 = vmul.f32 %v2334_v57, %v2151_v31 }
  0xa7   : > { %v1712_v48 = vpop.eup %1711  ;;  %640 = vmatpush.msra.mxu2 %v1710_v42  ;;  %1556 = vmatmul.msk.f32.vlgmr.msra.gmra.mxu1 %vm554_vm0, %v2220_v32  ;;  %1723 = vtanh.f32 %v436_v33  ;;  %v334_v33 = vmul.f32 %v2232_v41, %v2151_v31  ;;  %v2318_v42 = vperm.slane %v2214_v25, 4  ;;  %v373_v6 = vmul.f32 %v2342_v62, %v2134_v19 }
  0xa8   : > { %v1714_v54 = vpop.eup %1713  ;;  %669 = vmatpush.msra.mxu3 %v1712_v48  ;;  %1560 = vmatmul.msk.f32.vlgmr.msra.gmra.mxu2 %vm554_vm0, %v2220_v32  ;;  %1725 = vtanh.f32 %v437_v36  ;;  %v441_v36 = vadd.f32 %v2145_v28, %v353_v20  ;;  %v337_v48 = vmul.f32 %v2256_v58, %v2151_v31  ;;  %v409_v58 = vadd.f32 %v2174_v52, %v321_v1 }
  0xa9   : > { %v1716_v60 = vpop.eup %1715  ;;  %1564 = vmatmul.msk.f32.vlgmr.msra.gmra.mxu3 %vm554_vm0, %v2220_v32  ;;  %695 = vmatpush.msrb.mxu0 %v1696_v14  ;;  %1727 = vtanh.f32 %v418_v39  ;;  %v456_v14 = vadd.f32 %v2132_v18, %v368_v3  ;;  %v422_v39 = vadd.f32 %v2172_v51, %v334_v33  ;;  %v370_v45 = vmul.f32 %v2318_v42, %v2134_v19  ;;  %v2360_v3 = vld [vmem:[%s2700_s3 + $0x18] sm:$0xff] }
  0xaa   : > { %v1718_v63 = vpop.eup %1717  ;;  %724 = vmatpush.msrb.mxu1 %v1714_v54  ;;  %753 = vmatpush.msrb.mxu2 %v1716_v60  ;;  %1729 = vtanh.f32 %v419_v43  ;;  %v424_v54 = vadd.f32 %v2172_v51, %v336_v40  ;;  %v354_v9 = vmul.f32 %v2318_v42, %v2149_v30 }
  0xab   : > { %v1720_v2 = vpop.eup %1719  ;;  %782 = vmatpush.msrb.mxu3 %v1718_v63  ;;  %1731 = vtanh.f32 %v420_v49  ;;  %v2326_v49 = vperm.slane %v2214_v25, 5  ;;  %v407_v25 = vadd.f32 %v2174_v52, %v319_v61 }
  0xac   : > { %v1722_v5 = vpop.eup %1721  ;;  %696 = vmatpush.msrb.mxu0 %v1720_v2  ;;  %1733 = vtanh.f32 %v421_v56  ;;  %v318_v56 = vmul.f32 %v2232_v41, %v2167_v47 }
  0xad   : > { %v1724_v7 = vpop.eup %1723  ;;  %725 = vmatpush.msrb.mxu1 %v1722_v5  ;;  %1735 = vtanh.f32 %v402_v29  ;;  %v425_v29 = vadd.f32 %v2172_v51, %v337_v48  ;;  %v371_v2 = vmul.f32 %v2326_v49, %v2134_v19  ;;  %v372_v5 = vmul.f32 %v2334_v57, %v2134_v19 }
  0xae   : > { %v1726_v10 = vpop.eup %1725  ;;  %754 = vmatpush.msrb.mxu2 %v1724_v7  ;;  %1737 = vtanh.f32 %v403_v46  ;;  %1553 = vmatmul.msk.f32.gmra.mxu0 %vm554_vm0, %v2276_v4  ;;  %v406_v63 = vadd.f32 %v2174_v52, %v318_v56  ;;  %v320_v46 = vmul.f32 %v2248_v53, %v2167_v47  ;;  %v355_v12 = vmul.f32 %v2326_v49, %v2149_v30 }
  0xaf   : > { %v1728_v13 = vpop.eup %1727  ;;  %783 = vmatpush.msrb.mxu3 %v1726_v10  ;;  %1739 = vtanh.f32 %v404_v55  ;;  %1557 = vmatmul.msk.f32.gmra.mxu1 %vm554_vm0, %v2276_v4  ;;  %v339_v33 = vmul.f32 %v2326_v49, %v2151_v31 }
  0xb0   : > { %v1730_v16 = vpop.eup %1729  ;;  %697 = vmatpush.msrb.mxu0 %v1728_v13  ;;  %1741 = vtanh.f32 %v405_v59  ;;  %1561 = vmatmul.msk.f32.gmra.mxu2 %vm554_vm0, %v2276_v4  ;;  %v408_v53 = vadd.f32 %v2174_v52, %v320_v46  ;;  %v460_v13 = vadd.f32 %v2132_v18, %v372_v5 }
  0xb1   : > { %v1732_v21 = vpop.eup %1731  ;;  %726 = vmatpush.msrb.mxu1 %v1730_v16  ;;  %1743 = vtanh.f32 %v454_v8  ;;  %1565 = vmatmul.msk.f32.gmra.mxu3 %vm554_vm0, %v2276_v4  ;;  %v458_v8 = vadd.f32 %v2132_v18, %v370_v45  ;;  %v461_v16 = vadd.f32 %v2132_v18, %v373_v6 }
  0xb2   : > { %v1734_v23 = vpop.eup %1733  ;;  %755 = vmatpush.msrb.mxu2 %v1732_v21  ;;  %1745 = vtanh.f32 %v455_v11  ;;  %v459_v11 = vadd.f32 %v2132_v18, %v371_v2  ;;  %v442_v21 = vadd.f32 %v2145_v28, %v354_v9 }
  0xb3   : > { %v1736_v26 = vpop.eup %1735  ;;  %784 = vmatpush.msrb.mxu3 %v1734_v23  ;;  %1747 = vtanh.f32 %v456_v14  ;;  %v356_v14 = vmul.f32 %v2334_v57, %v2149_v30  ;;  %v443_v23 = vadd.f32 %v2145_v28, %v355_v12 }
  0xb4   : > { %v1738_v35 = vpop.eup %1737  ;;  %698 = vmatpush.msrb.mxu0 %v1736_v26  ;;  %1749 = vtanh.f32 %v457_v17  ;;  %v357_v17 = vmul.f32 %v2342_v62, %v2149_v30  ;;  %v338_v30 = vmul.f32 %v2318_v42, %v2151_v31 }
  0xb5   : > { %v1740_v38 = vpop.eup %1739  ;;  %727 = vmatpush.msrb.mxu1 %v1738_v35  ;;  %1751 = vtanh.f32 %v438_v22  ;;  %v444_v18 = vadd.f32 %v2145_v28, %v356_v14 }
  0xb6   : > { %v1742_v43 = vpop.eup %1741  ;;  %756 = vmatpush.msrb.mxu2 %v1740_v38  ;;  %1753 = vtanh.f32 %v439_v24  ;;  %1554 = vmatmul.msk.f32.gmra.mxu0 %vm554_vm0, %v2309_v34 }
  0xb7   : > { %v1744_v50 = vpop.eup %1743  ;;  %785 = vmatpush.msrb.mxu3 %v1742_v43  ;;  %1755 = vtanh.f32 %v440_v27  ;;  %1558 = vmatmul.msk.f32.gmra.mxu1 %vm554_vm0, %v2309_v34  ;;  %v445_v27 = vadd.f32 %v2145_v28, %v357_v17  ;;  %v341_v28 = vmul.f32 %v2342_v62, %v2151_v31  ;;  %v428_v43 = vadd.f32 %v2172_v51, %v340_v37 }
  0xb8   : > { %v1746_v60 = vpop.eup %1745  ;;  %811 = vmatpush.msra.mxu0 %v1744_v50  ;;  %1757 = vtanh.f32 %v441_v36  ;;  %1562 = vmatmul.msk.f32.gmra.mxu2 %vm554_vm0, %v2309_v34  ;;  %v426_v36 = vadd.f32 %v2172_v51, %v338_v30  ;;  %v323_v31 = vmul.f32 %v2326_v49, %v2167_v47 }
  0xb9   : > { %v1748_v41 = vpop.eup %1747  ;;  %840 = vmatpush.msra.mxu1 %v1746_v60  ;;  %1759 = vtanh.f32 %v422_v39  ;;  %1566 = vmatmul.msk.f32.gmra.mxu3 %vm554_vm0, %v2309_v34  ;;  %v427_v39 = vadd.f32 %v2172_v51, %v339_v33  ;;  %v429_v50 = vadd.f32 %v2172_v51, %v341_v28  ;;  %v325_v51 = vmul.f32 %v2342_v62, %v2167_v47 }
  0xba   : > { %v1750_v0 = vpop.eup %1749  ;;  %869 = vmatpush.msra.mxu2 %v1748_v41  ;;  %1761 = vtanh.f32 %v423_v44  ;;  %v322_v44 = vmul.f32 %v2318_v42, %v2167_v47  ;;  %v324_v42 = vmul.f32 %v2334_v57, %v2167_v47 }
  0xbb   : > { %v1752_v55 = vpop.eup %1751  ;;  %898 = vmatpush.msra.mxu3 %v1750_v0  ;;  %1763 = vtanh.f32 %v424_v54 }
  0xbc   : > { %v1754_v59 = vpop.eup %1753  ;;  %812 = vmatpush.msra.mxu0 %v1752_v55  ;;  %1765 = vtanh.f32 %v425_v29  ;;  %v410_v56 = vadd.f32 %v2174_v52, %v322_v44  ;;  %v411_v29 = vadd.f32 %v2174_v52, %v323_v31  ;;  %v412_v61 = vadd.f32 %v2174_v52, %v324_v42 }
  0xbd   : > { %v1756_v7 = vpop.eup %1755  ;;  %841 = vmatpush.msra.mxu1 %v1754_v59  ;;  %1767 = vtanh.f32 %v406_v63  ;;  %v413_v63 = vadd.f32 %v2174_v52, %v325_v51 }
  0xbe   : > { %v1758_v10 = vpop.eup %1757  ;;  %870 = vmatpush.msra.mxu2 %v1756_v7  ;;  %1769 = vtanh.f32 %v407_v25  ;;  %1555 = vmatmul.msk.f32.gmra.mxu0 %vm554_vm0, %v2360_v3 }
  0xbf   : > { %v1760_v19 = vpop.eup %1759  ;;  %899 = vmatpush.msra.mxu3 %v1758_v10  ;;  %1771 = vtanh.f32 %v408_v53  ;;  %1559 = vmatmul.msk.f32.gmra.mxu1 %vm554_vm0, %v2360_v3 }
  0xc0   : > { %v1762_v15 = vpop.eup %1761  ;;  %813 = vmatpush.msra.mxu0 %v1760_v19  ;;  %1773 = vtanh.f32 %v409_v58  ;;  %1563 = vmatmul.msk.f32.gmra.mxu2 %vm554_vm0, %v2360_v3  ;;  %v2511_v58 = vpop.permute.xlu2 %551 }
  0xc1   : > { %v1764_v20 = vpop.eup %1763  ;;  %842 = vmatpush.msra.mxu1 %v1762_v15  ;;  %1567 = vmatmul.msk.f32.gmra.mxu3 %vm554_vm0, %v2360_v3  ;;  %1775 = vtanh.f32 %v458_v8  ;;  %v2518_v15 = vpop.permute.xlu0 %546 }
  0xc2   : > { %v1766_v22 = vpop.eup %1765  ;;  %871 = vmatpush.msra.mxu2 %v1764_v20  ;;  %1777 = vtanh.f32 %v459_v11  ;;  %v2522_v20 = vpop.permute.xlu1 %541 }
  0xc3   : > { %v1768_v24 = vpop.eup %1767  ;;  %900 = vmatpush.msra.mxu3 %v1766_v22  ;;  %1779 = vtanh.f32 %v460_v13 }
  0xc4   : > { %v1770_v26 = vpop.eup %1769  ;;  %814 = vmatpush.msra.mxu0 %v1768_v24  ;;  %1781 = vtanh.f32 %v461_v16 }
  0xc5   : > { %v1772_v35 = vpop.eup %1771  ;;  %843 = vmatpush.msra.mxu1 %v1770_v26  ;;  %1783 = vtanh.f32 %v442_v21 }
  0xc6   : > { %v1774_v38 = vpop.eup %1773  ;;  %872 = vmatpush.msra.mxu2 %v1772_v35  ;;  %1568 = vmatmul.msk.f32.vlgmr.msrb.gmra.mxu0 %vm554_vm0, %v2220_v32  ;;  %1785 = vtanh.f32 %v443_v23 }
  0xc7   : > { %v1776_v40 = vpop.eup %1775  ;;  %901 = vmatpush.msra.mxu3 %v1774_v38  ;;  %1572 = vmatmul.msk.f32.vlgmr.msrb.gmra.mxu1 %vm554_vm0, %v2220_v32  ;;  %1787 = vtanh.f32 %v444_v18 }
  0xc8   : > { %v1778_v48 = vpop.eup %1777  ;;  %1576 = vmatmul.msk.f32.vlgmr.msrb.gmra.mxu2 %vm554_vm0, %v2220_v32  ;;  %927 = vmatpush.msrb.mxu0 %v1776_v40  ;;  %1789 = vtanh.f32 %v445_v27  ;;  %v2513_v9 = vpop.permute.xlu2 %536 }
  0xc9   : > { %v1780_v54 = vpop.eup %1779  ;;  %1580 = vmatmul.msk.f32.vlgmr.msrb.gmra.mxu3 %vm554_vm0, %v2220_v32  ;;  %956 = vmatpush.msrb.mxu1 %v1778_v48  ;;  %1791 = vtanh.f32 %v426_v36 }
  0xca   : > { %v1782_v60 = vpop.eup %1781  ;;  %985 = vmatpush.msrb.mxu2 %v1780_v54  ;;  %1793 = vtanh.f32 %v427_v39 }
  0xcb   : > { %v1784_v49 = vpop.eup %1783  ;;  %1014 = vmatpush.msrb.mxu3 %v1782_v60  ;;  %1795 = vtanh.f32 %v428_v43 }
  0xcc   : > { %v1786_v41 = vpop.eup %1785  ;;  %928 = vmatpush.msrb.mxu0 %v1784_v49  ;;  %1797 = vtanh.f32 %v429_v50 }
  0xcd   : > { %v1788_v46 = vpop.eup %1787  ;;  %957 = vmatpush.msrb.mxu1 %v1786_v41  ;;  %1799 = vtanh.f32 %v410_v56 }
  0xce   : > { %v1790_v57 = vpop.eup %1789  ;;  %986 = vmatpush.msrb.mxu2 %v1788_v46  ;;  %1801 = vtanh.f32 %v411_v29  ;;  %1569 = vmatmul.msk.f32.gmra.mxu0 %vm554_vm0, %v2276_v4 }
  0xcf   : > { %v1792_v47 = vpop.eup %1791  ;;  %1015 = vmatpush.msrb.mxu3 %v1790_v57  ;;  %1803 = vtanh.f32 %v412_v61  ;;  %1573 = vmatmul.msk.f32.gmra.mxu1 %vm554_vm0, %v2276_v4 }
  0xd0   : > { %v1794_v62 = vpop.eup %1793  ;;  %929 = vmatpush.msrb.mxu0 %v1792_v47  ;;  %1805 = vtanh.f32 %v413_v63  ;;  %1577 = vmatmul.msk.f32.gmra.mxu2 %vm554_vm0, %v2276_v4 }
  0xd1   : > { %v1796_v52 = vpop.eup %1795  ;;  %958 = vmatpush.msrb.mxu1 %v1794_v62  ;;  %1581 = vmatmul.msk.f32.gmra.mxu3 %vm554_vm0, %v2276_v4 }
  0xd2   : > { %v1798_v45 = vpop.eup %1797  ;;  %987 = vmatpush.msrb.mxu2 %v1796_v52 }
  0xd3   : > { %v1800_v0 = vpop.eup %1799  ;;  %1016 = vmatpush.msrb.mxu3 %v1798_v45 }
  0xd4   : > { %v1802_v25 = vpop.eup %1801  ;;  %930 = vmatpush.msrb.mxu0 %v1800_v0 }
  0xd5   : > { %v1804_v1 = vpop.eup %1803  ;;  %959 = vmatpush.msrb.mxu1 %v1802_v25 }
  0xd6   : > { %v1806_v2 = vpop.eup %1805  ;;  %988 = vmatpush.msrb.mxu2 %v1804_v1  ;;  %1570 = vmatmul.msk.f32.gmra.mxu0 %vm554_vm0, %v2309_v34 }
  0xd7   : > { %1017 = vmatpush.msrb.mxu3 %v1806_v2  ;;  %1574 = vmatmul.msk.f32.gmra.mxu1 %vm554_vm0, %v2309_v34 }
  0xd8   : > { %1578 = vmatmul.msk.f32.gmra.mxu2 %vm554_vm0, %v2309_v34 }
  0xd9   : > { %1582 = vmatmul.msk.f32.gmra.mxu3 %vm554_vm0, %v2309_v34 }
  0xde   : > { %1571 = vmatmul.msk.f32.gmra.mxu0 %vm554_vm0, %v2360_v3 }
  0xdf   : > { %1575 = vmatmul.msk.f32.gmra.mxu1 %vm554_vm0, %v2360_v3 }
  0xe0   : > { %1579 = vmatmul.msk.f32.gmra.mxu2 %vm554_vm0, %v2360_v3 }
  0xe1   : > { %1583 = vmatmul.msk.f32.gmra.mxu3 %vm554_vm0, %v2360_v3 }
  0xe6   : > { %1584 = vmatmul.msk.f32.vlgmr.msra.gmra.mxu0 %vm554_vm0, %v2220_v32 }
  0xe7   : > { %1588 = vmatmul.msk.f32.vlgmr.msra.gmra.mxu1 %vm554_vm0, %v2220_v32 }
  0xe8   : > { %1592 = vmatmul.msk.f32.vlgmr.msra.gmra.mxu2 %vm554_vm0, %v2220_v32 }
  0xe9   : > { %1596 = vmatmul.msk.f32.vlgmr.msra.gmra.mxu3 %vm554_vm0, %v2220_v32 }
  0xee   : > { %1585 = vmatmul.msk.f32.gmra.mxu0 %vm554_vm0, %v2276_v4 }
  0xef   : > { %1589 = vmatmul.msk.f32.gmra.mxu1 %vm554_vm0, %v2276_v4 }
  0xf0   : > { %1593 = vmatmul.msk.f32.gmra.mxu2 %vm554_vm0, %v2276_v4 }
  0xf1   : > { %1597 = vmatmul.msk.f32.gmra.mxu3 %vm554_vm0, %v2276_v4 }
  0xf6   : > { %1586 = vmatmul.msk.f32.gmra.mxu0 %vm554_vm0, %v2309_v34 }
  0xf7   : > { %1590 = vmatmul.msk.f32.gmra.mxu1 %vm554_vm0, %v2309_v34 }
  0xf8   : > { %1594 = vmatmul.msk.f32.gmra.mxu2 %vm554_vm0, %v2309_v34 }
  0xf9   : > { %1598 = vmatmul.msk.f32.gmra.mxu3 %vm554_vm0, %v2309_v34 }
  0xfe   : > { %1587 = vmatmul.msk.f32.gmra.mxu0 %vm554_vm0, %v2360_v3 }
  0xff   : > { %1591 = vmatmul.msk.f32.gmra.mxu1 %vm554_vm0, %v2360_v3 }
 0x100   : > { %1595 = vmatmul.msk.f32.gmra.mxu2 %vm554_vm0, %v2360_v3 }
 0x101   : > { %1599 = vmatmul.msk.f32.gmra.mxu3 %vm554_vm0, %v2360_v3 }
 0x106   : > { %1600 = vmatmul.msk.f32.vlgmr.msrb.gmra.mxu0 %vm554_vm0, %v2220_v32 }
 0x107   : > { %1604 = vmatmul.msk.f32.vlgmr.msrb.gmra.mxu1 %vm554_vm0, %v2220_v32 }
 0x108   : > { %1608 = vmatmul.msk.f32.vlgmr.msrb.gmra.mxu2 %vm554_vm0, %v2220_v32 }
 0x109   : > { %1612 = vmatmul.msk.f32.vlgmr.msrb.gmra.mxu3 %vm554_vm0, %v2220_v32 }
 0x10e   : > { %1601 = vmatmul.msk.f32.gmra.mxu0 %vm554_vm0, %v2276_v4 }
 0x10f   : > { %1605 = vmatmul.msk.f32.gmra.mxu1 %vm554_vm0, %v2276_v4 }
 0x110   : > { %1609 = vmatmul.msk.f32.gmra.mxu2 %vm554_vm0, %v2276_v4 }
 0x111   : > { %1613 = vmatmul.msk.f32.gmra.mxu3 %vm554_vm0, %v2276_v4 }
 0x116   : > { %1602 = vmatmul.msk.f32.gmra.mxu0 %vm554_vm0, %v2309_v34 }
 0x117   : > { %1606 = vmatmul.msk.f32.gmra.mxu1 %vm554_vm0, %v2309_v34 }
 0x118   : > { %1610 = vmatmul.msk.f32.gmra.mxu2 %vm554_vm0, %v2309_v34 }
 0x119   : > { %1614 = vmatmul.msk.f32.gmra.mxu3 %vm554_vm0, %v2309_v34 }
 0x11e   : > { %1603 = vmatmul.msk.f32.gmra.mxu0 %vm554_vm0, %v2360_v3 }
 0x11f   : > { %1607 = vmatmul.msk.f32.gmra.mxu1 %vm554_vm0, %v2360_v3 }
 0x120   : > { %1611 = vmatmul.msk.f32.gmra.mxu2 %vm554_vm0, %v2360_v3 }
 0x121   : > { %1615 = vmatmul.msk.f32.gmra.mxu3 %vm554_vm0, %v2360_v3 }
 0x123   : > { %v584_v32 = vpop.f32.mrf.mxu0 }
 0x124   : > { %v613_v4 = vpop.f32.mrf.mxu1  ;;  %v585_v10 = vadd.f32 %v584_v32, %v2513_v9 }
 0x125   : > { %v614_v11 = vadd.f32 %v613_v4, %v2513_v9 }
 0x126   : > { %1807 = vtanh.f32 %v585_v10 }
 0x127   : > { %1809 = vtanh.f32 %v614_v11 }
 0x12b   : > { %v642_v55 = vpop.f32.mrf.mxu2  ;;  %v587_v53 = vpop.f32.mrf.mxu0 }
 0x12c   : > { %v671_v5 = vpop.f32.mrf.mxu3  ;;  %v616_v59 = vpop.f32.mrf.mxu1  ;;  %v588_v22 = vadd.f32 %v587_v53, %v2522_v20  ;;  %v643_v48 = vadd.f32 %v642_v55, %v2513_v9 }
 0x12d   : > { %v617_v23 = vadd.f32 %v616_v59, %v2522_v20  ;;  %v1808_v30 = vpop.eup %1807  ;;  %v672_v31 = vadd.f32 %v671_v5, %v2513_v9 }
 0x12e   : > { %v1810_v36 = vpop.eup %1809 }
 0x133   : > { %v645_v34 = vpop.f32.mrf.mxu2  ;;  %v590_v6 = vpop.f32.mrf.mxu0 }
 0x134   : > { %v674_v7 = vpop.f32.mrf.mxu3  ;;  %v619_v8 = vpop.f32.mrf.mxu1  ;;  %v591_v17 = vadd.f32 %v590_v6, %v2518_v15  ;;  %v646_v28 = vadd.f32 %v645_v34, %v2522_v20 }
 0x135   : > { %v620_v21 = vadd.f32 %v619_v8, %v2518_v15  ;;  %v675_v43 = vadd.f32 %v674_v7, %v2522_v20 }
 0x13b   : > { %v648_v12 = vpop.f32.mrf.mxu2  ;;  %v593_v3 = vpop.f32.mrf.mxu0 }
 0x13c   : > { %v677_v19 = vpop.f32.mrf.mxu3  ;;  %v594_v13 = vadd.f32 %v593_v3, %v2511_v58  ;;  %v622_v14 = vpop.f32.mrf.mxu1  ;;  %v649_v26 = vadd.f32 %v648_v12, %v2518_v15 }
 0x13d   : > { %v623_v16 = vadd.f32 %v622_v14, %v2511_v58  ;;  %v678_v37 = vadd.f32 %v677_v19, %v2518_v15 }
 0x13e   : > { %1811 = vtanh.f32 %v594_v13 }
 0x13f   : > { %1813 = vtanh.f32 %v623_v16 }
 0x140   : > { %1815 = vtanh.f32 %v591_v17 }
 0x141   : > { %1817 = vtanh.f32 %v620_v21 }
 0x142   : > { %1819 = vtanh.f32 %v588_v22 }
 0x143   : > { %v651_v24 = vpop.f32.mrf.mxu2  ;;  %v700_v18 = vpop.f32.mrf.mxu0  ;;  %1821 = vtanh.f32 %v617_v23 }
 0x144   : > { %v652_v27 = vadd.f32 %v651_v24, %v2511_v58  ;;  %v680_v33 = vpop.f32.mrf.mxu3  ;;  %v729_v35 = vpop.f32.mrf.mxu1  ;;  %v701_v1 = vadd.f32 %v700_v18, %v2513_v9 }
 0x145   : > { %v681_v38 = vadd.f32 %v680_v33, %v2511_v58  ;;  %v1812_v39 = vpop.eup %1811  ;;  %v730_v2 = vadd.f32 %v729_v35, %v2513_v9  ;;  %v2564_v35 = vld [vmem:[%s2702_s5] sm:$0x1] }
 0x146   : > { %1823 = vtanh.f32 %v652_v27  ;;  %v1814_v40 = vpop.eup %1813  ;;  %1111 = vmatpush.msra.mxu0 %v1812_v39 }
 0x147   : > { %1825 = vtanh.f32 %v681_v38  ;;  %v1816_v44 = vpop.eup %1815  ;;  %1131 = vmatpush.msra.mxu1 %v1814_v40 }
 0x148   : > { %1827 = vtanh.f32 %v649_v26  ;;  %v1818_v50 = vpop.eup %1817  ;;  %1112 = vmatpush.msra.mxu0 %v1816_v44 }
 0x149   : > { %1829 = vtanh.f32 %v678_v37  ;;  %v1820_v54 = vpop.eup %1819  ;;  %1132 = vmatpush.msra.mxu1 %v1818_v50 }
 0x14a   : > { %1831 = vtanh.f32 %v646_v28  ;;  %v1822_v56 = vpop.eup %1821  ;;  %1113 = vmatpush.msra.mxu0 %v1820_v54 }
 0x14b   : > { %1833 = vtanh.f32 %v675_v43  ;;  %v2535_v42 = vpop.f32.mrf.mxu2  ;;  %v703_v60 = vpop.f32.mrf.mxu0  ;;  %1133 = vmatpush.msra.mxu1 %v1822_v56 }
 0x14c   : > { %v1824_v29 = vpop.eup %1823  ;;  %1835 = vtanh.f32 %v643_v48  ;;  %v2537_v51 = vpop.f32.mrf.mxu3  ;;  %1114 = vmatpush.msra.mxu0 %v1808_v30  ;;  %v704_v7 = vadd.f32 %v703_v60, %v2522_v20  ;;  %v759_v26 = vadd.f32 %v2535_v42, %v2513_v9 }
 0x14d   : > { %v732_v49 = vpop.f32.mrf.mxu1  ;;  %v1826_v61 = vpop.eup %1825  ;;  %1837 = vtanh.f32 %v672_v31  ;;  %1151 = vmatpush.msra.mxu2 %v1824_v29  ;;  %1134 = vmatpush.msra.mxu1 %v1810_v36  ;;  %v788_v33 = vadd.f32 %v2537_v51, %v2513_v9 }
 0x14e   : > { %v1828_v41 = vpop.eup %1827  ;;  %1171 = vmatpush.msra.mxu3 %v1826_v61  ;;  %1839 = vtanh.f32 %v701_v1  ;;  %v733_v8 = vadd.f32 %v732_v49, %v2522_v20  ;;  %1616 = vmatmul.msk.f32.vlgmr.msra.gmra.mxu0 %vm554_vm0, %v2564_v35 }
 0x14f   : > { %v1830_v63 = vpop.eup %1829  ;;  %1152 = vmatpush.msra.mxu2 %v1828_v41  ;;  %1841 = vtanh.f32 %v730_v2  ;;  %1617 = vmatmul.msk.f32.vlgmr.msra.gmra.mxu1 %vm554_vm0, %v2564_v35 }
 0x150   : > { %v1832_v46 = vpop.eup %1831  ;;  %1172 = vmatpush.msra.mxu3 %v1830_v63 }
 0x151   : > { %v1834_v57 = vpop.eup %1833  ;;  %1153 = vmatpush.msra.mxu2 %v1832_v46 }
 0x152   : > { %v1836_v47 = vpop.eup %1835  ;;  %1173 = vmatpush.msra.mxu3 %v1834_v57 }
 0x153   : > { %v1838_v62 = vpop.eup %1837  ;;  %v761_v52 = vpop.f32.mrf.mxu2  ;;  %1154 = vmatpush.msra.mxu2 %v1836_v47 }
 0x154   : > { %v706_v45 = vpop.f32.mrf.mxu0  ;;  %v790_v0 = vpop.f32.mrf.mxu3  ;;  %1174 = vmatpush.msra.mxu3 %v1838_v62  ;;  %v762_v23 = vadd.f32 %v761_v52, %v2522_v20  ;;  %1618 = vmatmul.msk.f32.vlgmr.msra.gmra.mxu2 %vm554_vm0, %v2564_v35 }
 0x155   : > { %v735_v25 = vpop.f32.mrf.mxu1  ;;  %v707_v34 = vadd.f32 %v706_v45, %v2518_v15  ;;  %v1840_v12 = vpop.eup %1839  ;;  %v791_v18 = vadd.f32 %v790_v0, %v2522_v20  ;;  %1619 = vmatmul.msk.f32.vlgmr.msra.gmra.mxu3 %vm554_vm0, %v2564_v35 }
 0x156   : > { %v736_v6 = vadd.f32 %v735_v25, %v2518_v15  ;;  %v1842_v16 = vpop.eup %1841 }
 0x15b   : > { %v764_v32 = vpop.f32.mrf.mxu2 }
 0x15c   : > { %v709_v4 = vpop.f32.mrf.mxu0  ;;  %v793_v55 = vpop.f32.mrf.mxu3  ;;  %v765_v3 = vadd.f32 %v764_v32, %v2518_v15 }
 0x15d   : > { %v710_v53 = vadd.f32 %v709_v4, %v2511_v58  ;;  %v738_v5 = vpop.f32.mrf.mxu1  ;;  %v794_v17 = vadd.f32 %v793_v55, %v2518_v15 }
 0x15e   : > { %v739_v59 = vadd.f32 %v738_v5, %v2511_v58 }
 0x15f   : > { %1843 = vtanh.f32 %v710_v53 }
 0x160   : > { %1845 = vtanh.f32 %v739_v59 }
 0x161   : > { %1847 = vtanh.f32 %v707_v34 }
 0x162   : > { %1849 = vtanh.f32 %v736_v6 }
 0x163   : > { %v767_v10 = vpop.f32.mrf.mxu2  ;;  %1851 = vtanh.f32 %v704_v7 }
 0x164   : > { %v2547_v11 = vpop.f32.mrf.mxu0  ;;  %v768_v19 = vadd.f32 %v767_v10, %v2511_v58  ;;  %v796_v13 = vpop.f32.mrf.mxu3  ;;  %1853 = vtanh.f32 %v733_v8 }
 0x165   : > { %v2551_v14 = vpop.f32.mrf.mxu1  ;;  %v797_v21 = vadd.f32 %v796_v13, %v2511_v58  ;;  %v1844_v22 = vpop.eup %1843  ;;  %v817_v61 = vadd.f32 %v2547_v11, %v2513_v9 }
 0x166   : > { %1855 = vtanh.f32 %v768_v19  ;;  %v1846_v24 = vpop.eup %1845  ;;  %1191 = vmatpush.msrb.mxu0 %v1844_v22  ;;  %v846_v41 = vadd.f32 %v2551_v14, %v2513_v9 }
 0x167   : > { %1857 = vtanh.f32 %v797_v21  ;;  %v1848_v30 = vpop.eup %1847  ;;  %1211 = vmatpush.msrb.mxu1 %v1846_v24 }
 0x168   : > { %1859 = vtanh.f32 %v765_v3  ;;  %v1850_v27 = vpop.eup %1849  ;;  %1192 = vmatpush.msrb.mxu0 %v1848_v30 }
 0x169   : > { %1861 = vtanh.f32 %v794_v17  ;;  %v1852_v36 = vpop.eup %1851  ;;  %1212 = vmatpush.msrb.mxu1 %v1850_v27 }
 0x16a   : > { %1863 = vtanh.f32 %v762_v23  ;;  %v1854_v37 = vpop.eup %1853  ;;  %1193 = vmatpush.msrb.mxu0 %v1852_v36 }
 0x16b   : > { %1865 = vtanh.f32 %v791_v18  ;;  %v2568_v38 = vpop.f32.mrf.mxu2  ;;  %1213 = vmatpush.msrb.mxu1 %v1854_v37 }
 0x16c   : > { %v819_v39 = vpop.f32.mrf.mxu0  ;;  %v1856_v28 = vpop.eup %1855  ;;  %1867 = vtanh.f32 %v759_v26  ;;  %1194 = vmatpush.msrb.mxu0 %v1840_v12  ;;  %v875_v19 = vadd.f32 %v2568_v38, %v2513_v9 }
 0x16d   : > { %v2572_v40 = vpop.f32.mrf.mxu3  ;;  %v848_v43 = vpop.f32.mrf.mxu1  ;;  %1869 = vtanh.f32 %v788_v33  ;;  %1231 = vmatpush.msrb.mxu2 %v1856_v28  ;;  %1214 = vmatpush.msrb.mxu1 %v1842_v16  ;;  %v820_v25 = vadd.f32 %v819_v39, %v2522_v20 }
 0x16e   : > { %v1858_v44 = vpop.eup %1857  ;;  %1620 = vmatmul.msk.f32.vlgmr.msrb.gmra.mxu0 %vm554_vm0, %v2564_v35  ;;  %1621 = vmatmul.msk.f32.vlgmr.msrb.gmra.mxu1 %vm554_vm0, %v2564_v35  ;;  %1871 = vtanh.f32 %v817_v61  ;;  %v849_v1 = vadd.f32 %v848_v43, %v2522_v20  ;;  %v904_v14 = vadd.f32 %v2572_v40, %v2513_v9 }
 0x16f   : > { %v1860_v48 = vpop.eup %1859  ;;  %1251 = vmatpush.msrb.mxu3 %v1858_v44  ;;  %1873 = vtanh.f32 %v846_v41 }
 0x170   : > { %v1862_v50 = vpop.eup %1861  ;;  %1232 = vmatpush.msrb.mxu2 %v1860_v48 }
 0x171   : > { %v1864_v31 = vpop.eup %1863  ;;  %1252 = vmatpush.msrb.mxu3 %v1862_v50 }
 0x172   : > { %v1866_v54 = vpop.eup %1865  ;;  %1233 = vmatpush.msrb.mxu2 %v1864_v31 }
 0x173   : > { %v1868_v56 = vpop.eup %1867  ;;  %1253 = vmatpush.msrb.mxu3 %v1866_v54  ;;  %v877_v60 = vpop.f32.mrf.mxu2 }
 0x174   : > { %v1870_v42 = vpop.eup %1869  ;;  %1234 = vmatpush.msrb.mxu2 %v1868_v56  ;;  %v822_v29 = vpop.f32.mrf.mxu0  ;;  %v878_v10 = vadd.f32 %v877_v60, %v2522_v20 }
 0x175   : > { %v906_v51 = vpop.f32.mrf.mxu3  ;;  %1254 = vmatpush.msrb.mxu3 %v1870_v42  ;;  %v851_v49 = vpop.f32.mrf.mxu1  ;;  %1622 = vmatmul.msk.f32.vlgmr.msrb.gmra.mxu2 %vm554_vm0, %v2564_v35  ;;  %v823_v45 = vadd.f32 %v822_v29, %v2518_v15 }
 0x176   : > { %1623 = vmatmul.msk.f32.vlgmr.msrb.gmra.mxu3 %vm554_vm0, %v2564_v35  ;;  %v852_v0 = vadd.f32 %v851_v49, %v2518_v15  ;;  %v1872_v4 = vpop.eup %1871  ;;  %v907_v12 = vadd.f32 %v906_v51, %v2522_v20 }
 0x177   : > { %v1874_v34 = vpop.eup %1873 }
 0x17b   : > { %v880_v63 = vpop.f32.mrf.mxu2 }
 0x17c   : > { %v825_v46 = vpop.f32.mrf.mxu0  ;;  %v881_v55 = vadd.f32 %v880_v63, %v2518_v15 }
 0x17d   : > { %v909_v57 = vpop.f32.mrf.mxu3  ;;  %v826_v47 = vadd.f32 %v825_v46, %v2511_v58  ;;  %v854_v62 = vpop.f32.mrf.mxu1 }
 0x17e   : > { %v855_v52 = vadd.f32 %v854_v62, %v2511_v58  ;;  %v910_v6 = vadd.f32 %v909_v57, %v2518_v15 }
 0x17f   : > { %1875 = vtanh.f32 %v826_v47 }
 0x180   : > { %1877 = vtanh.f32 %v855_v52 }
 0x181   : > { %1879 = vtanh.f32 %v823_v45 }
 0x182   : > { %1881 = vtanh.f32 %v852_v0 }
 0x183   : > { %v883_v2 = vpop.f32.mrf.mxu2  ;;  %1883 = vtanh.f32 %v820_v25 }
 0x184   : > { %v2596_v32 = vpop.f32.mrf.mxu0  ;;  %v884_v53 = vadd.f32 %v883_v2, %v2511_v58  ;;  %1885 = vtanh.f32 %v849_v1 }
 0x185   : > { %v912_v5 = vpop.f32.mrf.mxu3  ;;  %v961_v59 = vpop.f32.mrf.mxu1  ;;  %v933_v44 = vadd.f32 %v2596_v32, %v2513_v9 }
 0x186   : > { %v913_v7 = vadd.f32 %v912_v5, %v2511_v58  ;;  %v1876_v8 = vpop.eup %1875  ;;  %1887 = vtanh.f32 %v884_v53  ;;  %v962_v48 = vadd.f32 %v961_v59, %v2513_v9 }
 0x187   : > { %v1878_v11 = vpop.eup %1877  ;;  %1271 = vmatpush.msra.mxu0 %v1876_v8 }
 0x188   : > { %1889 = vtanh.f32 %v913_v7  ;;  %v1880_v3 = vpop.eup %1879  ;;  %1291 = vmatpush.msra.mxu1 %v1878_v11 }
 0x189   : > { %1891 = vtanh.f32 %v881_v55  ;;  %v1882_v13 = vpop.eup %1881  ;;  %1272 = vmatpush.msra.mxu0 %v1880_v3 }
 0x18a   : > { %1893 = vtanh.f32 %v910_v6  ;;  %v1884_v16 = vpop.eup %1883  ;;  %1292 = vmatpush.msra.mxu1 %v1882_v13 }
 0x18b   : > { %1895 = vtanh.f32 %v878_v10  ;;  %v1886_v17 = vpop.eup %1885  ;;  %v2608_v21 = vpop.f32.mrf.mxu2  ;;  %1273 = vmatpush.msra.mxu0 %v1884_v16 }
 0x18c   : > { %1897 = vtanh.f32 %v907_v12  ;;  %v935_v22 = vpop.f32.mrf.mxu0  ;;  %v1888_v23 = vpop.eup %1887  ;;  %1293 = vmatpush.msra.mxu1 %v1886_v17 }
 0x18d   : > { %1899 = vtanh.f32 %v875_v19  ;;  %v2610_v24 = vpop.f32.mrf.mxu3  ;;  %v964_v18 = vpop.f32.mrf.mxu1  ;;  %1274 = vmatpush.msra.mxu0 %v1872_v4  ;;  %1311 = vmatpush.msra.mxu2 %v1888_v23  ;;  %v936_v49 = vadd.f32 %v935_v22, %v2522_v20  ;;  %v991_v4 = vadd.f32 %v2608_v21, %v2513_v9 }
 0x18e   : > { %v1890_v30 = vpop.eup %1889  ;;  %1901 = vtanh.f32 %v904_v14  ;;  %1294 = vmatpush.msra.mxu1 %v1874_v34  ;;  %1624 = vmatmul.msk.f32.vlgmr.msra.gmra.mxu0 %vm554_vm0, %v2564_v35  ;;  %v965_v61 = vadd.f32 %v964_v18, %v2522_v20 }
 0x18f   : > { %v1892_v26 = vpop.eup %1891  ;;  %1331 = vmatpush.msra.mxu3 %v1890_v30  ;;  %1625 = vmatmul.msk.f32.vlgmr.msra.gmra.mxu1 %vm554_vm0, %v2564_v35  ;;  %1903 = vtanh.f32 %v933_v44 }
 0x190   : > { %v1894_v27 = vpop.eup %1893  ;;  %1312 = vmatpush.msra.mxu2 %v1892_v26  ;;  %1905 = vtanh.f32 %v962_v48 }
 0x191   : > { %v1896_v33 = vpop.eup %1895  ;;  %1332 = vmatpush.msra.mxu3 %v1894_v27 }
 0x192   : > { %v1898_v36 = vpop.eup %1897  ;;  %1313 = vmatpush.msra.mxu2 %v1896_v33 }
 0x193   : > { %v1900_v37 = vpop.eup %1899  ;;  %1333 = vmatpush.msra.mxu3 %v1898_v36  ;;  %v993_v39 = vpop.f32.mrf.mxu2 }
 0x194   : > { %v1902_v38 = vpop.eup %1901  ;;  %1314 = vmatpush.msra.mxu2 %v1900_v37  ;;  %v938_v28 = vpop.f32.mrf.mxu0  ;;  %v994_v25 = vadd.f32 %v993_v39, %v2522_v20 }
 0x195   : > { %v1022_v40 = vpop.f32.mrf.mxu3  ;;  %1334 = vmatpush.msra.mxu3 %v1902_v38  ;;  %v967_v43 = vpop.f32.mrf.mxu1  ;;  %1626 = vmatmul.msk.f32.vlgmr.msra.gmra.mxu2 %vm554_vm0, %v2564_v35  ;;  %v939_v29 = vadd.f32 %v938_v28, %v2518_v15 }
 0x196   : > { %1627 = vmatmul.msk.f32.vlgmr.msra.gmra.mxu3 %vm554_vm0, %v2564_v35  ;;  %v968_v51 = vadd.f32 %v967_v43, %v2518_v15  ;;  %v1904_v63 = vpop.eup %1903  ;;  %v1023_v2 = vadd.f32 %v1022_v40, %v2522_v20 }
 0x197   : > { %v1906_v62 = vpop.eup %1905 }
 0x19b   : > { %v996_v50 = vpop.f32.mrf.mxu2 }
 0x19c   : > { %v941_v31 = vpop.f32.mrf.mxu0  ;;  %v997_v46 = vadd.f32 %v996_v50, %v2518_v15 }
 0x19d   : > { %v1025_v54 = vpop.f32.mrf.mxu3  ;;  %v942_v56 = vadd.f32 %v941_v31, %v2511_v58  ;;  %v970_v42 = vpop.f32.mrf.mxu1 }
 0x19e   : > { %v971_v60 = vadd.f32 %v970_v42, %v2511_v58  ;;  %v1026_v52 = vadd.f32 %v1025_v54, %v2518_v15  ;;  %v1020_v15 = vadd.f32 %v2610_v24, %v2513_v9 }
 0x19f   : > { %1907 = vtanh.f32 %v942_v56 }
 0x1a0   : > { %1909 = vtanh.f32 %v971_v60 }
 0x1a1   : > { %1911 = vtanh.f32 %v939_v29 }
 0x1a2   : > { %1913 = vtanh.f32 %v968_v51 }
 0x1a3   : > { %v999_v41 = vpop.f32.mrf.mxu2  ;;  %1915 = vtanh.f32 %v936_v49 }
 0x1a4   : > { %v1000_v57 = vadd.f32 %v999_v41, %v2511_v58  ;;  %1917 = vtanh.f32 %v965_v61 }
 0x1a5   : > { %v1028_v47 = vpop.f32.mrf.mxu3  ;;  %v1908_v0 = vpop.eup %1907 }
 0x1a6   : > { %v1029_v45 = vadd.f32 %v1028_v47, %v2511_v58  ;;  %1919 = vtanh.f32 %v1000_v57  ;;  %v1910_v1 = vpop.eup %1909  ;;  %1351 = vmatpush.msrb.mxu0 %v1908_v0 }
 0x1a7   : > { %v1912_v32 = vpop.eup %1911  ;;  %1371 = vmatpush.msrb.mxu1 %v1910_v1 }
 0x1a8   : > { %1921 = vtanh.f32 %v1029_v45  ;;  %v1914_v55 = vpop.eup %1913  ;;  %1352 = vmatpush.msrb.mxu0 %v1912_v32 }
 0x1a9   : > { %1923 = vtanh.f32 %v997_v46  ;;  %v1916_v58 = vpop.eup %1915  ;;  %1372 = vmatpush.msrb.mxu1 %v1914_v55 }
 0x1aa   : > { %1925 = vtanh.f32 %v1026_v52  ;;  %v1918_v53 = vpop.eup %1917  ;;  %1353 = vmatpush.msrb.mxu0 %v1916_v58 }
 0x1ab   : > { %1927 = vtanh.f32 %v994_v25  ;;  %1373 = vmatpush.msrb.mxu1 %v1918_v53 }
 0x1ac   : > { %1929 = vtanh.f32 %v1023_v2  ;;  %v1920_v20 = vpop.eup %1919  ;;  %1354 = vmatpush.msrb.mxu0 %v1904_v63 }
 0x1ad   : > { %1931 = vtanh.f32 %v991_v4  ;;  %1391 = vmatpush.msrb.mxu2 %v1920_v20  ;;  %1374 = vmatpush.msrb.mxu1 %v1906_v62 }
 0x1ae   : > { %v1922_v5 = vpop.eup %1921  ;;  %1933 = vtanh.f32 %v1020_v15  ;;  %1628 = vmatmul.msk.f32.vlgmr.msrb.gmra.mxu0 %vm554_vm0, %v2564_v35  ;;  %1629 = vmatmul.msk.f32.vlgmr.msrb.gmra.mxu1 %vm554_vm0, %v2564_v35 }
 0x1af   : > { %v1924_v59 = vpop.eup %1923  ;;  %1411 = vmatpush.msrb.mxu3 %v1922_v5 }
 0x1b0   : > { %v1926_v34 = vpop.eup %1925  ;;  %1392 = vmatpush.msrb.mxu2 %v1924_v59 }
 0x1b1   : > { %v1928_v9 = vpop.eup %1927  ;;  %1412 = vmatpush.msrb.mxu3 %v1926_v34 }
 0x1b2   : > { %v1930_v6 = vpop.eup %1929  ;;  %1393 = vmatpush.msrb.mxu2 %v1928_v9 }
 0x1b3   : > { %v1932_v7 = vpop.eup %1931  ;;  %1413 = vmatpush.msrb.mxu3 %v1930_v6 }
 0x1b4   : > { %v1934_v8 = vpop.eup %1933  ;;  %1394 = vmatpush.msrb.mxu2 %v1932_v7 }
 0x1b5   : > { %1414 = vmatpush.msrb.mxu3 %v1934_v8  ;;  %1630 = vmatmul.msk.f32.vlgmr.msrb.gmra.mxu2 %vm554_vm0, %v2564_v35 }
 0x1b6   : > { %1631 = vmatmul.msk.f32.vlgmr.msrb.gmra.mxu3 %vm554_vm0, %v2564_v35 }
 0x1cb   : > { %v1116_v10 = vpop.f32.mrf.mxu0 }
 0x1cc   : > { %v1136_v11 = vpop.f32.mrf.mxu1 }
 0x1cd   : > { %v1435_v17 = vrot.slane %v1136_v11, 7 }
 0x1cf   : > { %v1450_v33 = vsel %vm1449_vm4, %v1116_v10, %v1435_v17 }
 0x1d7   : > { %v1156_v12 = vpop.f32.mrf.mxu2 }
 0x1d8   : > { %v1176_v3 = vpop.f32.mrf.mxu3  ;;  %v1436_v23 = vrot.slane %v1156_v12, 6 }
 0x1d9   : > { %v1437_v24 = vrot.slane %v1176_v3, 5 }
 0x1db   : > { %v1452_v26 = vsel %vm1451_vm2, %v1436_v23, %v1437_v24 }
 0x1dc   : > { %v1454_v37 = vsel %vm1453_vm6, %v1450_v33, %v1452_v26 }
 0x1eb   : > { %v1196_v19 = vpop.f32.mrf.mxu0  ;;  %v1216_v13 = vpop.f32.mrf.mxu1 }
 0x1ec   : > { %v1438_v21 = vrot.slane %v1196_v19, 4  ;;  %v1439_v22 = vrot.slane %v1216_v13, 3 }
 0x1ee   : > { %v1456_v35 = vsel %vm1455_vm1, %v1438_v21, %v1439_v22 }
 0x1f8   : > { %v1236_v14 = vpop.f32.mrf.mxu2 }
 0x1f9   : > { %v1256_v16 = vpop.f32.mrf.mxu3  ;;  %v1440_v18 = vrot.slane %v1236_v14, 2 }
 0x1fa   : > { %v1441_v30 = vrot.slane %v1256_v16, 1 }
 0x1fc   : > { %v1458_v27 = vsel %vm1457_vm3, %v1440_v18, %v1441_v30 }
 0x1fd   : > { %v1460_v36 = vsel %vm1459_vm5, %v1456_v35, %v1458_v27 }
 0x1fe   : > { %v1462_v38 = vsel %vm1461_vm7, %v1454_v37, %v1460_v36 }
 0x1ff   : > { %1472 = vst [vmem:[%s243_s20] sm:$0xff] %v1462_v38 }
 0x20b   : > { %v1276_v39 = vpop.f32.mrf.mxu0 }
 0x20c   : > { %v1296_v28 = vpop.f32.mrf.mxu1 }
 0x20d   : > { %v1442_v50 = vrot.slane %v1296_v28, 7 }
 0x20f   : > { %v1463_v61 = vsel %vm1449_vm4, %v1276_v39, %v1442_v50 }
 0x218   : > { %v1316_v40 = vpop.f32.mrf.mxu2 }
 0x219   : > { %v1336_v43 = vpop.f32.mrf.mxu3  ;;  %v1443_v31 = vrot.slane %v1316_v40, 6 }
 0x21a   : > { %v1444_v54 = vrot.slane %v1336_v43, 5 }
 0x21c   : > { %v1464_v49 = vsel %vm1451_vm2, %v1443_v31, %v1444_v54 }
 0x21d   : > { %v1465_v57 = vsel %vm1453_vm6, %v1463_v61, %v1464_v49 }
 0x22b   : > { %v1356_v44 = vpop.f32.mrf.mxu0  ;;  %v1376_v48 = vpop.f32.mrf.mxu1 }
 0x22c   : > { %v1445_v56 = vrot.slane %v1356_v44, 4  ;;  %v1446_v42 = vrot.slane %v1376_v48, 3 }
 0x22e   : > { %v1466_v41 = vsel %vm1455_vm1, %v1445_v56, %v1446_v42 }
 0x238   : > { %v1396_v60 = vpop.f32.mrf.mxu2 }
 0x239   : > { %v1447_v29 = vrot.slane %v1396_v60, 2  ;;  %v1416_v51 = vpop.f32.mrf.mxu3 }
 0x23a   : > { %v1448_v63 = vrot.slane %v1416_v51, 1 }
 0x23c   : > { %v1467_v46 = vsel %vm1457_vm3, %v1447_v29, %v1448_v63 }
 0x23d   : > { %v1468_v47 = vsel %vm1459_vm5, %v1466_v41, %v1467_v46 }
 0x23e   : > { %v1469_v62 = vsel %vm1461_vm7, %v1465_v57, %v1468_v47 }
 0x23f   : > { %1473 = vst [vmem:[%s243_s20 + $0x8] sm:$0xff] %v1469_v62 }
 0x240   : > { %1962 = shalt.err (!%p1959_p3)
}
 0x241   : > { %1636 = dma.vmem_to_hbm [thread:$0]  (%p2072_p5), %s1488_s29, 256, %s1490_s9, %s1475_s18  }
 0x242 PF: > { %p1642_p4 = scmp.ge.s32.totalorder %s1997_s24, 2  ;;  %s1501_s17 = sand.u32 1, %s1985_s21  }
 0x243   : > { %s1502_s19 = scalar_lea.sflag [#allocation3], %s1501_s17 }
 0x244   : > { %p1639_p7 = pnand %p1642_p4, %p2076_p6 }
 0x246   : > { %p1640_p8 = pneg %p1639_p7 }
 0x248   : > { %1980 = dma.done.wait (%p1640_p8), %s1502_s19, 256  }
 0x249   : > { %1982 = vsyncadd (%p1640_p8), %s1502_s19, 4294967040  ;;  %p16_p9 = scmp.ge.s32.totalorder %s2058_s27, 4   ;;  %s2706_s21 = smov %s1989_s22 }
 0x24a   : > { %s2707_s22 = smov %s1993_s23  ;;  %s2708_s23 = smov %s2070_s30 }
 0x24b   : > { %s2709_s24 = smov %s2058_s27  ;;  %18 = sbr.rel (!%p16_p9) target bundleno = 3 (0x3), region = 79 }
 0x250   :  { %1508 = vsyncpa [#allocation3], 1 }
 0x251   :  { %1510 = vsyncpa [#allocation3 + $0x1], 1 }

</bundles_post_ra>
